<compile_context>
chip_gen: v6e
topology: v6e:2x2x1
jax: 0.10.0
libtpu: 0.0.40
codegen_flags: <defaults>
</compile_context>

<pallas_src>
import jax
import jax.numpy as jnp
from jax.experimental import pallas as pl
from jax.experimental.pallas import tpu as pltpu

N_CLASSES = 3
N_LOGIT_PAD = 128        # lane-dense padded logit width (softmax computed over this)
H1, H2, H3 = 256, 128, 64
H3_PAD = 128             # fc3 output padded to a full lane width
BN_EPS = 1e-5
# padded logit columns get this bias -> exp() underflows to exactly 0 in f32
NEG_BIAS = float(jnp.finfo(jnp.float32).min) / 2.0


def _round_up(x, m):
    return (x + m - 1) // m * m


def stressnet_kernel(x_ref,
                     w1_ref, b1_ref,
                     w2_ref, b2_ref,
                     w3_ref, b3_ref,
                     w4_ref, b4_ref,
                     out_ref):
    # Activations go through the MXU in bf16; accumulation and epilogue stay f32.
    h = x_ref[...].astype(jnp.bfloat16)

    # fc1 -> folded BN1 -> ReLU   (drop1 = identity in eval)
    h = jnp.dot(h, w1_ref[...], preferred_element_type=jnp.float32) + b1_ref[...]
    h = jnp.maximum(h, 0.0).astype(jnp.bfloat16)

    # fc2 -> folded BN2 -> ReLU   (drop2 = identity in eval)
    h = jnp.dot(h, w2_ref[...], preferred_element_type=jnp.float32) + b2_ref[...]
    h = jnp.maximum(h, 0.0).astype(jnp.bfloat16)

    # fc3 -> folded BN3 -> ReLU (output zero-padded 64->128; pad cols stay 0 after ReLU)
    h = jnp.dot(h, w3_ref[...], preferred_element_type=jnp.float32) + b3_ref[...]
    h = jnp.maximum(h, 0.0).astype(jnp.bfloat16)

    # fc4 -> softmax over padded 128-wide logits (pad cols biased to ~ -1.7e38 -> prob 0)
    logits = jnp.dot(h, w4_ref[...], preferred_element_type=jnp.float32) + b4_ref[...]
    m = jnp.max(logits, axis=1, keepdims=True)
    e = jnp.exp(logits - m)
    denom = jnp.sum(e, axis=1, keepdims=True)
    inv = pl.reciprocal(denom, approx=True)           # EUP slot
    # Narrow store: only the 3 real classes leave the kernel.
    out_ref[...] = e[:, :N_CLASSES] * inv


def stressnet_forward(x, params, tile_b=2048, vmem_limit_bytes=None):
    """x: [B, input_size] f32. params: folded/padded weights (bf16 w, f32 b).
    Returns [B, 3] f32 softmax probabilities."""
    B, F = x.shape
    TB = min(_round_up(tile_b, 8), _round_up(B, 8))
    Bp = _round_up(B, TB)
    if Bp != B:
        x = jnp.pad(x, ((0, Bp - B), (0, 0)))

    weight_args = (params["w1"], params["b1"],
                   params["w2"], params["b2"],
                   params["w3"], params["b3"],
                   params["w4"], params["b4"])

    def const_spec(a):
        # full-array block, same block every grid step -> stays resident in VMEM
        return pl.BlockSpec(a.shape, lambda i: (0, 0))

    flops = 2 * Bp * (F * H1 + H1 * H2 + H2 * H3_PAD + H3_PAD * N_LOGIT_PAD)
    weight_bytes = int(sum(a.size * a.dtype.itemsize for a in weight_args))
    bytes_accessed = Bp * F * x.dtype.itemsize + Bp * N_CLASSES * 4 + weight_bytes
    cost = pl.CostEstimate(flops=int(flops),
                           transcendentals=int(Bp * (N_LOGIT_PAD + 1)),
                           bytes_accessed=int(bytes_accessed))

    cp_kwargs = dict(dimension_semantics=("parallel",))
    if vmem_limit_bytes is not None:
        cp_kwargs["vmem_limit_bytes"] = int(vmem_limit_bytes)

    out = pl.pallas_call(
        stressnet_kernel,
        out_shape=jax.ShapeDtypeStruct((Bp, N_CLASSES), jnp.float32),
        grid=(Bp // TB,),
        in_specs=[pl.BlockSpec((TB, F), lambda i: (i, 0))]
                 + [const_spec(a) for a in weight_args],
        out_specs=pl.BlockSpec((TB, N_CLASSES), lambda i: (i, 0)),
        compiler_params=pltpu.CompilerParams(**cp_kwargs),
        cost_estimate=cost,
    )(x, *weight_args)

    return out if Bp == B else out[:B]


# ------------------------- parameter construction -------------------------

def _init_linear(key, fan_in, fan_out):
    """PyTorch nn.Linear default init: U(-1/sqrt(fan_in), +1/sqrt(fan_in))."""
    kw, kb = jax.random.split(key)
    bound = 1.0 / jnp.sqrt(jnp.float32(fan_in))
    # stored as [in, out] (transposed relative to PyTorch's [out, in])
    w = jax.random.uniform(kw, (fan_in, fan_out), jnp.float32, -bound, bound)
    b = jax.random.uniform(kb, (fan_out,), jnp.float32, -bound, bound)
    return w, b


def make_raw_params(key, input_size):
    """Raw (unfolded) StressNet params, incl. non-trivial BN running stats so the
    fold path is actually exercised."""
    sizes = [(input_size, H1), (H1, H2), (H2, H3), (H3, N_CLASSES)]
    keys = jax.random.split(key, 8)
    raw = {}
    for i, (fi, fo) in enumerate(sizes, start=1):
        w, b = _init_linear(keys[i - 1], fi, fo)
        raw[f"w{i}"] = w
        raw[f"b{i}"] = b
        if i < 4:
            kg, kb2, km, kv = jax.random.split(keys[3 + i], 4)
            raw[f"gamma{i}"] = 1.0 + 0.1 * jax.random.normal(kg, (fo,), jnp.float32)
            raw[f"beta{i}"] = 0.1 * jax.random.normal(kb2, (fo,), jnp.float32)
            raw[f"mean{i}"] = 0.1 * jax.random.normal(km, (fo,), jnp.float32)
            raw[f"var{i}"] = 1.0 + 0.1 * jax.random.uniform(kv, (fo,), jnp.float32)
    return raw


def fold_and_pad_params(raw):
    """Fold eval-mode BN into the linear weights, pad the tail layers lane-dense,
    and store the matmul weights in bf16 (biases stay f32)."""
    p = {}
    for i in range(1, 4):
        s = raw[f"gamma{i}"] / jnp.sqrt(raw[f"var{i}"] + BN_EPS)
        t = raw[f"beta{i}"] - raw[f"mean{i}"] * s
        w = raw[f"w{i}"] * s[None, :]
        b = raw[f"b{i}"] * s + t
        if i == 3:  # pad fc3 output 64 -> 128 (zeros; ReLU keeps pad columns at 0)
            w = jnp.pad(w, ((0, 0), (0, H3_PAD - H3)))
            b = jnp.pad(b, ((0, H3_PAD - H3),))
        p[f"w{i}"] = w.astype(jnp.bfloat16)
        p[f"b{i}"] = b.reshape(1, -1).astype(jnp.float32)
    # fc4: pad K 64 -> 128 (zero rows) and N 3 -> 128 (zero cols, NEG_BIAS bias)
    w4 = jnp.zeros((H3_PAD, N_LOGIT_PAD), jnp.float32).at[:H3, :N_CLASSES].set(raw["w4"])
    b4 = jnp.full((N_LOGIT_PAD,), NEG_BIAS, jnp.float32).at[:N_CLASSES].set(raw["b4"])
    p["w4"] = w4.astype(jnp.bfloat16)
    p["b4"] = b4.reshape(1, -1)
    return p


def reference_forward(x, raw):
    """Pure-JAX f32 reference matching PyTorch eval() semantics."""
    h = x
    for i in range(1, 4):
        h = h @ raw[f"w{i}"] + raw[f"b{i}"]
        h = (h - raw[f"mean{i}"]) / jnp.sqrt(raw[f"var{i}"] + BN_EPS)
        h = h * raw[f"gamma{i}"] + raw[f"beta{i}"]
        h = jnp.maximum(h, 0.0)
    logits = h @ raw["w4"] + raw["b4"]
    return jax.nn.softmax(logits, axis=1)


if __name__ == "__main__":
    key = jax.random.PRNGKey(0)
    k_x, k_p = jax.random.split(key)

    B, input_size = 8, 32
    x = jax.random.normal(k_x, (B, input_size), jnp.float32)

    raw = make_raw_params(k_p, input_size)
    params = fold_and_pad_params(raw)

    out = stressnet_forward(x, params)
    out = jax.block_until_ready(out)

    ref = reference_forward(x, raw)
    assert out.shape == (B, N_CLASSES)
    # tolerance accounts for bf16 matmuls (f32 accumulate) and the approx (EUP) reciprocal
    assert jnp.allclose(out, ref, atol=2e-2, rtol=2e-2), float(jnp.max(jnp.abs(out - ref)))
    assert jnp.allclose(jnp.sum(out, axis=1), jnp.ones((B,)), atol=3e-3)

    print("KERNEL_OK")
</pallas_src>

<mosaic_0001>
module attributes {stable_mosaic.version = 11 : i64} {
  func.func @stressnet_kernel(%arg0: i32, %arg1: memref<8x32xf32, #tpu.memory_space<vmem>>, %arg2: memref<32x256xbf16, #tpu.memory_space<vmem>>, %arg3: memref<1x256xf32, #tpu.memory_space<vmem>>, %arg4: memref<256x128xbf16, #tpu.memory_space<vmem>>, %arg5: memref<1x128xf32, #tpu.memory_space<vmem>>, %arg6: memref<128x128xbf16, #tpu.memory_space<vmem>>, %arg7: memref<1x128xf32, #tpu.memory_space<vmem>>, %arg8: memref<128x128xbf16, #tpu.memory_space<vmem>>, %arg9: memref<1x128xf32, #tpu.memory_space<vmem>>, %arg10: memref<8x3xf32, #tpu.memory_space<vmem>>) attributes {dimension_semantics = [#tpu.dimension_semantics<parallel>], iteration_bounds = array<i64: 1>, scalar_prefetch = 0 : i64, scratch_operands = 0 : i64, tpu.core_type = #tpu.core_type<tc>, window_params = [{transform_indices = @transform_0, window_bounds = array<i64: 8, 32>}, {pipeline_mode = #tpu.pipeline_mode<synchronous>, transform_indices = @transform_1, window_bounds = array<i64: 32, 256>}, {pipeline_mode = #tpu.pipeline_mode<synchronous>, transform_indices = @transform_2, window_bounds = array<i64: 1, 256>}, {pipeline_mode = #tpu.pipeline_mode<synchronous>, transform_indices = @transform_3, window_bounds = array<i64: 256, 128>}, {pipeline_mode = #tpu.pipeline_mode<synchronous>, transform_indices = @transform_4, window_bounds = array<i64: 1, 128>}, {pipeline_mode = #tpu.pipeline_mode<synchronous>, transform_indices = @transform_5, window_bounds = array<i64: 128, 128>}, {pipeline_mode = #tpu.pipeline_mode<synchronous>, transform_indices = @transform_6, window_bounds = array<i64: 1, 128>}, {pipeline_mode = #tpu.pipeline_mode<synchronous>, transform_indices = @transform_7, window_bounds = array<i64: 128, 128>}, {pipeline_mode = #tpu.pipeline_mode<synchronous>, transform_indices = @transform_8, window_bounds = array<i64: 1, 128>}, {transform_indices = @transform_9, window_bounds = array<i64: 8, 3>}]} {
    %c0 = arith.constant 0 : index
    %c0_0 = arith.constant 0 : index
    %0 = vector.load %arg1[%c0, %c0_0] : memref<8x32xf32, #tpu.memory_space<vmem>>, vector<8x32xf32>
    %1 = arith.truncf %0 : vector<8x32xf32> to vector<8x32xbf16>
    %c0_1 = arith.constant 0 : index
    %c0_2 = arith.constant 0 : index
    %2 = vector.load %arg2[%c0_1, %c0_2] : memref<32x256xbf16, #tpu.memory_space<vmem>>, vector<32x256xbf16>
    %cst = arith.constant dense<0.000000e+00> : vector<8x256xf32>
    %3 = tpu.matmul %1, %2, %cst {dimension_numbers = #tpu.dot_dimension_numbers<[1], [0], [0], [1], [0, 0, 1, 1], [], []>} : vector<8x32xbf16>, vector<32x256xbf16>, vector<8x256xf32> -> vector<8x256xf32>
    %c0_3 = arith.constant 0 : index
    %c0_4 = arith.constant 0 : index
    %4 = vector.load %arg3[%c0_3, %c0_4] : memref<1x256xf32, #tpu.memory_space<vmem>>, vector<1x256xf32>
    %5 = vector.broadcast %4 : vector<1x256xf32> to vector<8x256xf32>
    %6 = arith.addf %3, %5 : vector<8x256xf32>
    %cst_5 = arith.constant 0.000000e+00 : f32
    %7 = vector.broadcast %cst_5 : f32 to vector<8x256xf32>
    %8 = arith.maximumf %6, %7 : vector<8x256xf32>
    %9 = arith.truncf %8 : vector<8x256xf32> to vector<8x256xbf16>
    %c0_6 = arith.constant 0 : index
    %c0_7 = arith.constant 0 : index
    %10 = vector.load %arg4[%c0_6, %c0_7] : memref<256x128xbf16, #tpu.memory_space<vmem>>, vector<256x128xbf16>
    %cst_8 = arith.constant dense<0.000000e+00> : vector<8x128xf32>
    %11 = tpu.matmul %9, %10, %cst_8 {dimension_numbers = #tpu.dot_dimension_numbers<[1], [0], [0], [1], [0, 0, 1, 1], [], []>} : vector<8x256xbf16>, vector<256x128xbf16>, vector<8x128xf32> -> vector<8x128xf32>
    %c0_9 = arith.constant 0 : index
    %c0_10 = arith.constant 0 : index
    %12 = vector.load %arg5[%c0_9, %c0_10] : memref<1x128xf32, #tpu.memory_space<vmem>>, vector<1x128xf32>
    %13 = vector.broadcast %12 : vector<1x128xf32> to vector<8x128xf32>
    %14 = arith.addf %11, %13 : vector<8x128xf32>
    %cst_11 = arith.constant 0.000000e+00 : f32
    %15 = vector.broadcast %cst_11 : f32 to vector<8x128xf32>
    %16 = arith.maximumf %14, %15 : vector<8x128xf32>
    %17 = arith.truncf %16 : vector<8x128xf32> to vector<8x128xbf16>
    %c0_12 = arith.constant 0 : index
    %c0_13 = arith.constant 0 : index
    %18 = vector.load %arg6[%c0_12, %c0_13] : memref<128x128xbf16, #tpu.memory_space<vmem>>, vector<128x128xbf16>
    %cst_14 = arith.constant dense<0.000000e+00> : vector<8x128xf32>
    %19 = tpu.matmul %17, %18, %cst_14 {dimension_numbers = #tpu.dot_dimension_numbers<[1], [0], [0], [1], [0, 0, 1, 1], [], []>} : vector<8x128xbf16>, vector<128x128xbf16>, vector<8x128xf32> -> vector<8x128xf32>
    %c0_15 = arith.constant 0 : index
    %c0_16 = arith.constant 0 : index
    %20 = vector.load %arg7[%c0_15, %c0_16] : memref<1x128xf32, #tpu.memory_space<vmem>>, vector<1x128xf32>
    %21 = vector.broadcast %20 : vector<1x128xf32> to vector<8x128xf32>
    %22 = arith.addf %19, %21 : vector<8x128xf32>
    %cst_17 = arith.constant 0.000000e+00 : f32
    %23 = vector.broadcast %cst_17 : f32 to vector<8x128xf32>
    %24 = arith.maximumf %22, %23 : vector<8x128xf32>
    %25 = arith.truncf %24 : vector<8x128xf32> to vector<8x128xbf16>
    %c0_18 = arith.constant 0 : index
    %c0_19 = arith.constant 0 : index
    %26 = vector.load %arg8[%c0_18, %c0_19] : memref<128x128xbf16, #tpu.memory_space<vmem>>, vector<128x128xbf16>
    %cst_20 = arith.constant dense<0.000000e+00> : vector<8x128xf32>
    %27 = tpu.matmul %25, %26, %cst_20 {dimension_numbers = #tpu.dot_dimension_numbers<[1], [0], [0], [1], [0, 0, 1, 1], [], []>} : vector<8x128xbf16>, vector<128x128xbf16>, vector<8x128xf32> -> vector<8x128xf32>
    %c0_21 = arith.constant 0 : index
    %c0_22 = arith.constant 0 : index
    %28 = vector.load %arg9[%c0_21, %c0_22] : memref<1x128xf32, #tpu.memory_space<vmem>>, vector<1x128xf32>
    %29 = vector.broadcast %28 : vector<1x128xf32> to vector<8x128xf32>
    %30 = arith.addf %27, %29 : vector<8x128xf32>
    %cst_23 = arith.constant dense<0xFF800000> : vector<8xf32>
    %31 = vector.multi_reduction <maximumf>, %30, %cst_23 [1] : vector<8x128xf32> to vector<8xf32>
    %32 = vector.shape_cast %31 : vector<8xf32> to vector<8x1xf32>
    %33 = vector.broadcast %32 : vector<8x1xf32> to vector<8x128xf32>
    %34 = arith.subf %30, %33 : vector<8x128xf32>
    %35 = math.exp %34 : vector<8x128xf32>
    %cst_24 = arith.constant dense<0.000000e+00> : vector<8xf32>
    %36 = vector.multi_reduction <add>, %35, %cst_24 [1] : vector<8x128xf32> to vector<8xf32>
    %37 = vector.shape_cast %36 : vector<8xf32> to vector<8x1xf32>
    %38 = tpu.reciprocal %37 {approx = true} : vector<8x1xf32> -> vector<8x1xf32>
    %39 = vector.extract_strided_slice %35 {offsets = [0, 0], sizes = [8, 3], strides = [1, 1]} : vector<8x128xf32> to vector<8x3xf32>
    %40 = vector.broadcast %38 : vector<8x1xf32> to vector<8x3xf32>
    %41 = arith.mulf %39, %40 : vector<8x3xf32>
    %c0_25 = arith.constant 0 : index
    %c0_26 = arith.constant 0 : index
    %42 = vector.load %arg10[%c0_25, %c0_26] : memref<8x3xf32, #tpu.memory_space<vmem>>, vector<8x3xf32>
    tpu.vector_store %arg10[%c0_25, %c0_26], %41 {strides = array<i32>} : memref<8x3xf32, #tpu.memory_space<vmem>>, vector<8x3xf32>,
    return
  }
  func.func @transform_0(%arg0: i32) -> (i32, i32) {
    %c0_i32 = arith.constant 0 : i32
    %c0_i32_0 = arith.constant 0 : i32
    return %arg0, %c0_i32 : i32, i32
  }
  func.func @transform_1(%arg0: i32) -> (i32, i32) {
    %c0_i32 = arith.constant 0 : i32
    %c0_i32_0 = arith.constant 0 : i32
    %c0_i32_1 = arith.constant 0 : i32
    return %c0_i32, %c0_i32_0 : i32, i32
  }
  func.func @transform_2(%arg0: i32) -> (i32, i32) {
    %c0_i32 = arith.constant 0 : i32
    %c0_i32_0 = arith.constant 0 : i32
    %c0_i32_1 = arith.constant 0 : i32
    return %c0_i32, %c0_i32_0 : i32, i32
  }
  func.func @transform_3(%arg0: i32) -> (i32, i32) {
    %c0_i32 = arith.constant 0 : i32
    %c0_i32_0 = arith.constant 0 : i32
    %c0_i32_1 = arith.constant 0 : i32
    return %c0_i32, %c0_i32_0 : i32, i32
  }
  func.func @transform_4(%arg0: i32) -> (i32, i32) {
    %c0_i32 = arith.constant 0 : i32
    %c0_i32_0 = arith.constant 0 : i32
    %c0_i32_1 = arith.constant 0 : i32
    return %c0_i32, %c0_i32_0 : i32, i32
  }
  func.func @transform_5(%arg0: i32) -> (i32, i32) {
    %c0_i32 = arith.constant 0 : i32
    %c0_i32_0 = arith.constant 0 : i32
    %c0_i32_1 = arith.constant 0 : i32
    return %c0_i32, %c0_i32_0 : i32, i32
  }
  func.func @transform_6(%arg0: i32) -> (i32, i32) {
    %c0_i32 = arith.constant 0 : i32
    %c0_i32_0 = arith.constant 0 : i32
    %c0_i32_1 = arith.constant 0 : i32
    return %c0_i32, %c0_i32_0 : i32, i32
  }
  func.func @transform_7(%arg0: i32) -> (i32, i32) {
    %c0_i32 = arith.constant 0 : i32
    %c0_i32_0 = arith.constant 0 : i32
    %c0_i32_1 = arith.constant 0 : i32
    return %c0_i32, %c0_i32_0 : i32, i32
  }
  func.func @transform_8(%arg0: i32) -> (i32, i32) {
    %c0_i32 = arith.constant 0 : i32
    %c0_i32_0 = arith.constant 0 : i32
    %c0_i32_1 = arith.constant 0 : i32
    return %c0_i32, %c0_i32_0 : i32, i32
  }
  func.func @transform_9(%arg0: i32) -> (i32, i32) {
    %c0_i32 = arith.constant 0 : i32
    %c0_i32_0 = arith.constant 0 : i32
    return %arg0, %c0_i32 : i32, i32
  }
}

</mosaic_0001>

<bundles_post_ra>
// kernel: tpu_custom_call.1
= control target key start
LH: loop header
LB: loop body
LE: loop exit
PB: predicated region body
PF: predicated region fallthrough
CT: control target
= control target key end

     0   :  { %14 = vsyncpa [#allocation3], 0  ;;  %s1004_s0 = inlined_call_operand.hbm [shape: f32[8,32], index: 0, kind: input, shape index: {}]   ;;  %s1005_s1 = inlined_call_operand.hbm [shape: bf16[32,256], index: 1, kind: input, shape index: {}]   ;;  %s1006_s2 = inlined_call_operand.vmem [shape: f32[1,256], index: 2, kind: input, shape index: {}]   ;;  %s1007_s3 = inlined_call_operand.hbm [shape: bf16[256,128], index: 3, kind: input, shape index: {}]   ;;  %s1008_s4 = inlined_call_operand.vmem [shape: f32[1,128], index: 4, kind: input, shape index: {}]   ;;  %s1009_s5 = inlined_call_operand.hbm [shape: bf16[128,128], index: 5, kind: input, shape index: {}]   ;;  %s1010_s6 = inlined_call_operand.vmem [shape: f32[1,128], index: 6, kind: input, shape index: {}]   ;;  %s1011_s7 = inlined_call_operand.hbm [shape: bf16[128,128], index: 7, kind: input, shape index: {}]   ;;  %s1012_s8 = inlined_call_operand.vmem [shape: f32[1,128], index: 8, kind: input, shape index: {}]   ;;  %s1013_s9 = inlined_call_operand.vmem [shape: f32[8,3], index: 9, kind: output, shape index: {}]  }
   0x1   :  { %15 = vsyncpa [#allocation5], 0 }
   0x2   :  { %16 = vsyncpa [#allocation8], 0  ;;  %s885_s30 = smov [#allocation4]  }
   0x3   :  { %s32_s10 = sshll.u32 %s885_s30, 4  ;;  %s33_s10 = int_to_ptr.vmem [resolvable:$true] %s32_s10 }
   0x4   :  { %s787_s11 = scalar_lea.vmem %s33_s10, 512  ;;  %p792_p1 = scmp.lt.s32.totalorder %s33_s10, %s33_s10 }
   0x5   :  { %p788_p0 = scmp.ne.s32.totalorder %s33_s10, %s787_s11  ;;  %p793_p2 = scmp.lt.s32.totalorder %s787_s11, %s787_s11 }
   0x7   :  { %p794_p3 = por %p793_p2, %p792_p1 }
   0x9   :  { %p795_p4 = pnand %p794_p3, %p788_p0 }
   0xb   :  { %798 = shalt.err (!%p795_p4)
}
   0xc   :  { %s886_s12 = smov 128   ;;  %s887_s13 = smov 8  }
   0xd   :  { %38 = dma.hbm_to_vmem [thread:$0]  %s1005_s1, 512, %s33_s10, [#allocation5], %s886_s12, %s886_s12, %s887_s13  }
   0xe   :  { %s888_s16 = smov [#allocation7]   ;;  %s889_s18 = smov [#allocation2]  }
   0xf   :  { %s60_s17 = sshll.u32 %s888_s16, 4  ;;  %s23_s19 = sshll.u32 %s889_s18, 4  ;;  %s61_s17 = int_to_ptr.vmem [resolvable:$true] %s60_s17  ;;  %s24_s19 = int_to_ptr.vmem [resolvable:$true] %s23_s19 }
  0x10   :  { %s807_s20 = scalar_lea.vmem %s61_s17, 1024  ;;  %p812_p6 = scmp.lt.s32.totalorder %s61_s17, %s61_s17 }
  0x11   :  { %p808_p5 = scmp.ne.s32.totalorder %s61_s17, %s807_s20  ;;  %p813_p7 = scmp.lt.s32.totalorder %s807_s20, %s807_s20 }
  0x13   :  { %p814_p8 = por %p813_p7, %p812_p6 }
  0x15   :  { %p815_p9 = pnand %p814_p8, %p808_p5 }
  0x17   :  { %818 = shalt.err (!%p815_p9)
}
  0x18   :  { %s890_s21 = smov 64   ;;  %s891_s22 = smov 4  }
  0x19   :  { %66 = dma.hbm_to_vmem [thread:$0]  %s1009_s5, 1024, %s61_s17, [#allocation8], %s890_s21, %s890_s21, %s891_s22  }
  0x1a   :  { %s827_s1 = scalar_lea.vmem %s24_s19, 128  ;;  %p832_p11 = scmp.lt.s32.totalorder %s24_s19, %s24_s19 }
  0x1b   :  { %p828_p10 = scmp.ne.s32.totalorder %s24_s19, %s827_s1  ;;  %p833_p12 = scmp.lt.s32.totalorder %s827_s1, %s827_s1 }
  0x1d   :  { %p834_p13 = por %p833_p12, %p832_p11 }
  0x1f   :  { %p835_p0 = pnand %p834_p13, %p828_p10 }
  0x21   :  { %838 = shalt.err (!%p835_p0)
}
  0x22   :  { %26 = dma.hbm_to_vmem [thread:$0]  %s1004_s0, 128, %s24_s19, [#allocation3]  }
  0x23   :  { %s892_s27 = smov [#allocation6]   ;;  %s893_s29 = smov [#allocation9]  }
  0x24   :  { %s46_s28 = sshll.u32 %s892_s27, 4  ;;  %s74_s30 = sshll.u32 %s893_s29, 4  ;;  %s47_s28 = int_to_ptr.vmem [resolvable:$true] %s46_s28  ;;  %s75_s30 = int_to_ptr.vmem [resolvable:$true] %s74_s30 }
  0x25   :  { %s847_s10 = scalar_lea.vmem %s47_s28, 2048  ;;  %p852_p2 = scmp.lt.s32.totalorder %s47_s28, %s47_s28 }
  0x26   :  { %p848_p1 = scmp.ne.s32.totalorder %s47_s28, %s847_s10  ;;  %p853_p3 = scmp.lt.s32.totalorder %s847_s10, %s847_s10 }
  0x28   :  { %p854_p4 = por %p853_p3, %p852_p2 }
  0x2a   :  { %p855_p5 = pnand %p854_p4, %p848_p1 }
  0x2c   :  { %858 = shalt.err (!%p855_p5)
}
  0x2d   :  { %52 = dma.hbm_to_vmem [thread:$0]  %s1007_s3, 2048, %s47_s28, [#allocation5], %s890_s21, %s890_s21, %s891_s22  }
  0x2e   :  { %s867_s0 = scalar_lea.vmem %s75_s30, 1024  ;;  %p872_p7 = scmp.lt.s32.totalorder %s75_s30, %s75_s30 }
  0x2f   :  { %p868_p6 = scmp.ne.s32.totalorder %s75_s30, %s867_s0  ;;  %p873_p8 = scmp.lt.s32.totalorder %s867_s0, %s867_s0 }
  0x31   :  { %p874_p9 = por %p873_p8, %p872_p7 }
  0x33   :  { %p875_p10 = pnand %p874_p9, %p868_p6 }
  0x35   :  { %878 = shalt.err (!%p875_p10)
}
  0x36   :  { %80 = dma.hbm_to_vmem [thread:$0]  %s1011_s7, 1024, %s75_s30, [#allocation8], %s890_s21, %s890_s21, %s891_s22  }
  0x37   :  { %879 = dma.done.wait [#allocation3], 128  }
  0x38   :  { %880 = vsyncadd [#allocation3], 4294967168 }
  0x39   :  { %881 = dma.done.wait [#allocation5], 2560  }
  0x3a   :  { %882 = vsyncadd [#allocation5], 4294964736 }
  0x3b   :  { %883 = dma.done.wait [#allocation8], 2048  }
  0x3c   :  { %884 = vsyncadd [#allocation8], 4294965248  ;;  %v894_v0 = vmov 0   ;;  %v737_v1 = vld [vmem:[#allocation4 + $0x14] ss:$8 sps:$4 sm:$0xff]   ;;  %vm137_vm0 = vcmask 261120   ;;  %v107_v29 = vlaneseq }
  0x3d   :  { %173 = vmatprep.mubr.bf16.mxu0 %v894_v0  ;;  %v739_v2 = vld [vmem:[#allocation4 + $0x10] ss:$8 sps:$4 sm:$0xff]   ;;  %153 = vmatprep.subr.bf16.mxu0 %v737_v1  ;;  %v740_v3 = vld [vmem:[#allocation4 + $0x4] ss:$8 sps:$4 sm:$0xff]   ;;  %v742_v4 = vld [vmem:[#allocation4] ss:$8 sps:$4 sm:$0xff]  }
  0x3e   :  { %v99_v5 = vld [vmem:[#allocation2] sm:$0xff]  ;;  %154 = vmatpush1.bf16.msra.mxu0 %v739_v2  ;;  %v745_v8 = vld [vmem:[#allocation6 + $0x70] sm:$0xff]   ;;  %v747_v11 = vld [vmem:[#allocation6 + $0x68] sm:$0xff]   ;;  %v895_v24 = vmov 0.0   ;;  %v108_v30 = vshrl.u32 %v107_v29, 7  ;;  %vm896_vm1 = vmmov 0  }
  0x3f   :  { %v743_v6 = vld [vmem:[#allocation6 + $0x78] sm:$0xff]   ;;  %155 = vmatprep.subr.bf16.mxu0 %v740_v3  ;;  %v100_v9 = vpack.c.bf16 %v99_v5, %v99_v5  ;;  %v746_v10 = vld [vmem:[#allocation6 + $0x30] sm:$0xff]   ;;  %v748_v12 = vld [vmem:[#allocation6 + $0x28] sm:$0xff]   ;;  %vm596_vm2 = vcmask 23552  }
  0x40   :  { %v744_v7 = vld [vmem:[#allocation6 + $0x38] sm:$0xff]   ;;  %645 = vmatprep.subr.bf16.mxu1 %v743_v6  ;;  %v749_v13 = vld [vmem:[#allocation6 + $0x60] sm:$0xff]   ;;  %v753_v17 = vld [vmem:[#allocation6 + $0x50] sm:$0xff]   ;;  %v109_v31 = vsub.s32 0, %v108_v30  ;;  %v113_v33 = vsub.s32 1, %v108_v30 }
  0x41   :  { %646 = vmatpush3.bf16.msra.mxu1 %v744_v7  ;;  %v750_v14 = vld [vmem:[#allocation6 + $0x20] sm:$0xff]   ;;  %v751_v15 = vld [vmem:[#allocation6 + $0x58] sm:$0xff]   ;;  %v754_v18 = vld [vmem:[#allocation6 + $0x10] sm:$0xff]  }
  0x42   :  { %156 = vmatpush1.bf16.msra.mxu0 %v742_v4  ;;  %647 = vmatprep.subr.bf16.mxu1 %v745_v8  ;;  %v752_v16 = vld [vmem:[#allocation6 + $0x18] sm:$0xff]   ;;  %v755_v19 = vld [vmem:[#allocation6 + $0x48] sm:$0xff]   ;;  %v757_v21 = vld [vmem:[#allocation6 + $0x40] sm:$0xff]  }
  0x43   :  { %v756_v20 = vld [vmem:[#allocation6 + $0x8] sm:$0xff]   ;;  %v758_v22 = vld [vmem:[#allocation6] sm:$0xff]   ;;  %v759_v23 = vld [vmem:[#allocation7 + $0x38] sm:$0xff]   ;;  %685 = vmatprep.subr.bf16.mxu0 %v895_v24 }
  0x44   :  { %v760_v25 = vld [vmem:[#allocation7 + $0x30] sm:$0xff]   ;;  %v761_v26 = vld [vmem:[#allocation7 + $0x28] sm:$0xff]   ;;  %v762_v27 = vld [vmem:[#allocation7 + $0x20] sm:$0xff]  }
  0x45   :  { %609 = vmatmul.mubr.msk.bf16.vlgmr.msra.gmra.mxu0 %vm137_vm0, %v100_v9  ;;  %648 = vmatpush3.bf16.msra.mxu1 %v746_v10  ;;  %v763_v28 = vld [vmem:[#allocation7 + $0x18] sm:$0xff]   ;;  %v764_v46 = vld [vmem:[#allocation7 + $0x10] sm:$0xff]   ;;  %v765_v47 = vld [vmem:[#allocation7 + $0x8] sm:$0xff]  }
  0x46   :  { %649 = vmatprep.subr.bf16.mxu1 %v747_v11  ;;  %686 = vmatpush3.bf16.msra.mxu0 %v759_v23  ;;  %v105_v32 = vld [vmem:[%s1006_s2] sm:$0x3]  ;;  %v766_v48 = vld [vmem:[#allocation7] sm:$0xff]   ;;  %v768_v50 = vld [vmem:[#allocation9 + $0x30] sm:$0xff]  }
  0x47   :  { %687 = vmatprep.subr.bf16.mxu0 %v895_v24  ;;  %v110_v34 = vrot.slane %v105_v32, %v109_v31  ;;  %v114_v35 = vrot.slane %v105_v32, %v113_v33  ;;  %701 = vmatprep.mubr.msk.bf16.mxu0 %vm896_vm1, %v895_v24  ;;  %v767_v49 = vld [vmem:[#allocation9 + $0x38] sm:$0xff]   ;;  %v769_v51 = vld [vmem:[#allocation9 + $0x28] sm:$0xff]   ;;  %v770_v52 = vld [vmem:[#allocation9 + $0x20] sm:$0xff]  }
  0x48   :  { %v771_v53 = vld [vmem:[#allocation9 + $0x18] sm:$0xff]   ;;  %v772_v54 = vld [vmem:[#allocation9 + $0x10] sm:$0xff]   ;;  %v773_v0 = vld [vmem:[#allocation9 + $0x8] sm:$0xff]  }
  0x49   :  { %650 = vmatpush3.bf16.msra.mxu1 %v748_v12  ;;  %v610_v56 = vld [vmem:[%s1008_s4] ss:$0 sm:$0xff]  ;;  %v774_v1 = vld [vmem:[#allocation9] sm:$0xff]  }
  0x4a   :  { %651 = vmatprep.subr.bf16.mxu1 %v749_v13  ;;  %688 = vmatpush3.bf16.msra.mxu0 %v760_v25  ;;  %v627_v2 = vld [vmem:[%s1010_s6] ss:$0 sm:$0xff] }
  0x4b   :  { %689 = vmatprep.subr.bf16.mxu0 %v895_v24  ;;  %v636_v10 = vld [vmem:[%s1012_s8] ss:$0 sm:$0xff] }
  0x4d   :  { %652 = vmatpush3.bf16.msra.mxu1 %v750_v14 }
  0x4e   :  { %653 = vmatprep.subr.bf16.mxu1 %v751_v15  ;;  %690 = vmatpush3.bf16.msra.mxu0 %v761_v26 }
  0x4f   :  { %691 = vmatprep.subr.bf16.mxu0 %v895_v24 }
  0x51   :  { %654 = vmatpush3.bf16.msra.mxu1 %v752_v16 }
  0x52   :  { %655 = vmatprep.subr.bf16.mxu1 %v753_v17  ;;  %692 = vmatpush3.bf16.msra.mxu0 %v762_v27 }
  0x53   :  { %693 = vmatprep.subr.bf16.mxu0 %v895_v24 }
  0x55   :  { %656 = vmatpush3.bf16.msra.mxu1 %v754_v18 }
  0x56   :  { %657 = vmatprep.subr.bf16.mxu1 %v755_v19  ;;  %694 = vmatpush3.bf16.msra.mxu0 %v763_v28 }
  0x57   :  { %695 = vmatprep.subr.bf16.mxu0 %v895_v24 }
  0x59   :  { %658 = vmatpush3.bf16.msra.mxu1 %v756_v20 }
  0x5a   :  { %659 = vmatprep.subr.bf16.mxu1 %v757_v21  ;;  %696 = vmatpush3.bf16.msra.mxu0 %v764_v46 }
  0x5b   :  { %697 = vmatprep.subr.bf16.mxu0 %v895_v24 }
  0x5d   :  { %660 = vmatpush3.bf16.msra.mxu1 %v758_v22 }
  0x5e   :  { %705 = vmatprep.subr.bf16.mxu1 %v895_v24  ;;  %698 = vmatpush3.bf16.msra.mxu0 %v765_v47 }
  0x5f   :  { %699 = vmatprep.subr.bf16.mxu0 %v895_v24 }
  0x62   :  { %700 = vmatpush3.bf16.msra.mxu0 %v766_v48 }
 0x105   :  { %v175_v36 = vpop.f32.mrf.mxu0 }
 0x106   :  { %v176_v37 = vadd.f32 %v175_v36, %v110_v34 }
 0x107   :  { %v177_v38 = vpop.f32.mrf.mxu0 }
 0x108   :  { %v178_v39 = vadd.f32 %v177_v38, %v114_v35  ;;  %v182_v40 = vmax.f32 %v176_v37, 0.0 }
 0x109   :  { %v179_v41 = vpop.f32.mrf.mxu0 }
 0x10a   :  { %v183_v42 = vmax.f32 %v178_v39, 0.0  ;;  %v184_v45 = vpack.c.bf16 %v182_v40, %v182_v40 }
 0x10b   :  { %v180_v43 = vpop.f32.mrf.mxu0 }
 0x10c   :  { %v185_v44 = vpack.c.bf16 %v183_v42, %v183_v42 }
 0x10e   :  { %353 = vmatprep.mubr.bf16.mxu1 %v185_v44 }
 0x10f   :  { %354 = vmatmul.mubr.bf16.vlgmr.msra.gmra.mxu1 %v184_v45 }
 0x110   :  { %721 = vmatprep.mubr.msk.bf16.mxu1 %vm896_vm1, %v895_v24  ;;  %706 = vmatpush3.bf16.msra.mxu1 %v767_v49 }
 0x111   :  { %707 = vmatprep.subr.bf16.mxu1 %v895_v24 }
 0x114   :  { %708 = vmatpush3.bf16.msra.mxu1 %v768_v50 }
 0x115   :  { %709 = vmatprep.subr.bf16.mxu1 %v895_v24 }
 0x118   :  { %710 = vmatpush3.bf16.msra.mxu1 %v769_v51 }
 0x119   :  { %711 = vmatprep.subr.bf16.mxu1 %v895_v24 }
 0x11c   :  { %712 = vmatpush3.bf16.msra.mxu1 %v770_v52 }
 0x11d   :  { %713 = vmatprep.subr.bf16.mxu1 %v895_v24 }
 0x120   :  { %714 = vmatpush3.bf16.msra.mxu1 %v771_v53 }
 0x121   :  { %715 = vmatprep.subr.bf16.mxu1 %v895_v24 }
 0x124   :  { %716 = vmatpush3.bf16.msra.mxu1 %v772_v54 }
 0x125   :  { %717 = vmatprep.subr.bf16.mxu1 %v895_v24 }
 0x128   :  { %718 = vmatpush3.bf16.msra.mxu1 %v773_v0 }
 0x129   :  { %719 = vmatprep.subr.bf16.mxu1 %v895_v24 }
 0x12c   :  { %720 = vmatpush3.bf16.msra.mxu1 %v774_v1 }
 0x1cf   :  { %v661_v55 = vpop.f32.mrf.mxu1 }
 0x1d1   :  { %v662_v57 = vpop.f32.mrf.mxu1 }
 0x1d2   :  { %v663_v58 = vadd.f32 %v662_v57, %v661_v55 }
 0x1d3   :  { %v664_v59 = vpop.f32.mrf.mxu1 }
 0x1d4   :  { %v356_v60 = vadd.f32 %v663_v58, %v610_v56 }
 0x1d5   :  { %v665_v61 = vpop.f32.mrf.mxu1 }
 0x1d6   :  { %v361_v62 = vmax.f32 %v356_v60, 0.0 }
 0x1d8   :  { %v362_v63 = vpack.c.bf16 %v361_v62, %v361_v62 }
 0x1da   :  { %702 = vmatmul.mubr.bf16.vlgmr.msra.gmra.mxu0 %v362_v63 }
 0x29a   :  { %v468_v3 = vpop.f32.mrf.mxu0 }
 0x29b   :  { %v469_v4 = vadd.f32 %v627_v2, %v468_v3 }
 0x29c   :  { %v703_v5 = vpop.f32.mrf.mxu0 }
 0x29d   :  { %v474_v6 = vmax.f32 %v469_v4, 0.0 }
 0x29e   :  { %v471_v7 = vpop.f32.mrf.mxu0 }
 0x29f   :  { %v475_v8 = vpack.c.bf16 %v474_v6, %v474_v6 }
 0x2a0   :  { %v704_v9 = vpop.f32.mrf.mxu0 }
 0x2a1   :  { %722 = vmatmul.mubr.bf16.vlgmr.msra.gmra.mxu1 %v475_v8 }
 0x361   :  { %v581_v11 = vpop.f32.mrf.mxu1 }
 0x362   :  { %v582_v12 = vadd.f32 %v636_v10, %v581_v11 }
 0x363   :  { %v723_v13 = vpop.f32.mrf.mxu1 }
 0x364   :  { %587 = vmax.xlane.f32.xlu0 %v582_v12 }
 0x365   :  { %v584_v14 = vpop.f32.mrf.mxu1 }
 0x367   :  { %v724_v15 = vpop.f32.mrf.mxu1 }
 0x3ed   :  { %v588_v16 = vpop.xlane.xlu0 %587 }
 0x3ee   :  { %v589_v17 = vsub.f32 %v582_v12, %v588_v16 }
 0x3f0   :  { %v590_v18 = vmul.f32 1.442695, %v589_v17 }
 0x3f2   :  { %775 = vpow2.f32 %v590_v18 }
 0x3ff   :  { %v776_v19 = vpop.eup %775 }
 0x400   :  { %592 = vadd.xlane.f32.xlu0 %v776_v19 }
 0x489   :  { %v593_v20 = vpop.xlane.xlu0 %592 }
 0x48a   :  { %777 = vrcp.f32 %v593_v20 }
 0x497   :  { %v778_v21 = vpop.eup %777 }
 0x498   :  { %v595_v22 = vmul.f32 %v778_v21, %v776_v19 }
 0x49a   :  { %597 = vst.msk [vmem:[%s1013_s9] sm:$0xff] %vm596_vm2, %v595_v22 }
 0x49b   :  { %602 = vsyncpa [#allocation3], 1 }
 0x49c   :  { %603 = vsyncpa [#allocation5], 1 }
 0x49d   :  { %604 = vsyncpa [#allocation8], 1 }

</bundles_post_ra>
